<compile_context>
chip_gen: v7x
topology: tpu7x:2x2x1
jax: 0.10.0
libtpu: 0.0.40
codegen_flags: <defaults>
</compile_context>

<pallas_src>
import functools
import math

import jax
import jax.numpy as jnp
from jax.experimental import pallas as pl
from jax.experimental.pallas import tpu as pltpu

_LANES = 128
_SUBLANES = 8
_MSE_MAX_ROWS = 2048                 # 2048x128 f32 = 1 MiB per operand buffer
_MSE_NUM_CORES = 2                   # v7x has 2 TCs; pure sequential split elsewhere
_GW_VMEM_BUDGET = 10 << 20           # counts ~14 live (H,gwb) slabs (inputs x2,
                                     # masks x2, fused matmul out x2, acc,
                                     # roll/abs/loss temporaries) -> v5e-safe
_GRAY_VMEM_BUDGET = 8 << 20


def _round_up(x, m):
    return ((x + m - 1) // m) * m


# ------------------------- MSE loss (forward hot path) -----------------------

def _sse_kernel(a_ref, b_ref, o_ref, acc_ref, *, tr, rows, inner, need_mask):
    c = pl.program_id(0)
    i = pl.program_id(1)

    @pl.when(i == 0)
    def _():
        acc_ref[...] = jnp.zeros_like(acc_ref)

    # cast in-kernel: bf16/f16 inputs are never up-cast to f32 copies in HBM
    d = a_ref[...].astype(jnp.float32) - b_ref[...].astype(jnp.float32)
    sq = d * d
    g = c * inner + i                        # global row-block index

    def add(x):
        # single-vreg accumulator: (tr,128)->(tr/8,8,128) is tile aligned, the
        # axis-0 sum is a pure VPU tree-add; one (8,128) load+store per step.
        acc_ref[...] += jnp.sum(x.reshape(tr // _SUBLANES, _SUBLANES, _LANES),
                                axis=0)

    if need_mask:
        full = (g + 1) * tr <= rows          # only the trailing block(s) mask

        @pl.when(full)
        def _():
            add(sq)

        @pl.when(jnp.logical_not(full))
        def _():
            rid = g * tr + jax.lax.broadcasted_iota(jnp.int32, sq.shape, 0)
            add(jnp.where(rid < rows, sq, 0.0))
    else:
        add(sq)

    @pl.when(i == inner - 1)
    def _():
        o_ref[...] = acc_ref[...].reshape(1, _SUBLANES, _LANES)


def pallas_mse(a, b):
    assert a.shape == b.shape
    n = a.size
    fa = a.reshape(-1)
    fb = b.reshape(-1)
    n_main = (n // _LANES) * _LANES
    tail_sse = jnp.float32(0.0)
    if n_main < n:
        # <128-element tail handled in plain JAX (no full-tensor pad copy)
        ta = fa[n_main:].astype(jnp.float32)
        tb = fb[n_main:].astype(jnp.float32)
        tail_sse = jnp.sum((ta - tb) * (ta - tb))
        fa = fa[:n_main]
        fb = fb[:n_main]
    if n_main == 0:
        return tail_sse / jnp.float32(n)

    rows = n_main // _LANES
    a2 = fa.reshape(rows, _LANES)
    b2 = fb.reshape(rows, _LANES)
    tr = min(_MSE_MAX_ROWS, _round_up(rows, _SUBLANES))
    nb = pl.cdiv(rows, tr)                   # real row-block count
    nc = _MSE_NUM_CORES if nb >= 2 else 1    # per-core partial sums (v7x 2 TCs)
    inner = pl.cdiv(nb, nc)
    need_mask = (nc * inner * tr != rows)
    nb_last = nb - 1

    def idx(c, i):
        # clamp phantom trailing blocks (when nc*inner > nb) onto the last
        # real block; their contribution is fully masked in-kernel.
        return (jnp.minimum(c * inner + i, nb_last), 0)

    kern = functools.partial(_sse_kernel, tr=tr, rows=rows, inner=inner,
                             need_mask=need_mask)
    partial = pl.pallas_call(
        kern,
        out_shape=jax.ShapeDtypeStruct((nc, _SUBLANES, _LANES), jnp.float32),
        grid_spec=pltpu.PrefetchScalarGridSpec(
            num_scalar_prefetch=0,
            grid=(nc, inner),
            in_specs=[pl.BlockSpec((tr, _LANES), idx),
                      pl.BlockSpec((tr, _LANES), idx)],
            out_specs=pl.BlockSpec((1, _SUBLANES, _LANES),
                                   lambda c, i: (c, 0, 0)),
            scratch_shapes=[pltpu.VMEM((_SUBLANES, _LANES), jnp.float32)]),
        compiler_params=pltpu.CompilerParams(
            dimension_semantics=("parallel", "arbitrary")),
    )(a2, b2)
    sse = jnp.sum(partial) + tail_sse
    return sse / jnp.float32(n)


# ------------------------- to_gray_tensor ------------------------------------

def _gray_kernel(x_ref, o_ref):
    x = x_ref[...].astype(jnp.float32)          # cast in-kernel
    o_ref[...] = 0.299 * x[:, 0, :] + 0.587 * x[:, 1, :] + 0.114 * x[:, 2, :]


def pallas_to_gray(x):
    B, C, H, W = x.shape
    assert C == 3
    hw = H * W
    x3 = x.reshape(B, 3, hw)                    # lane-dense: H*W on the lane axis
    lane_cap = 32768
    tl = hw if hw <= lane_cap else lane_cap     # full dim or a 128-multiple tile
    # VMEM accounting: the (gb,3,tl) input tile pads 3->8 sublanes; input and
    # output are both double-buffered.  f32 element size used as upper bound.
    per_img = 2 * (8 * tl * 4 + tl * 4)
    gb = max(1, min(B, _GRAY_VMEM_BUDGET // per_img))
    grid = (pl.cdiv(B, gb), pl.cdiv(hw, tl))
    gray = pl.pallas_call(
        _gray_kernel,
        out_shape=jax.ShapeDtypeStruct((B, hw), jnp.float32),
        grid_spec=pltpu.PrefetchScalarGridSpec(
            num_scalar_prefetch=0,
            grid=grid,
            in_specs=[pl.BlockSpec((gb, 3, tl), lambda i, j: (i, 0, j))],
            out_specs=pl.BlockSpec((gb, tl), lambda i, j: (i, j))),
        compiler_params=pltpu.CompilerParams(
            dimension_semantics=("parallel", "parallel")),
    )(x3)
    return gray.reshape(B, 1, H, W)


# ------------------------- GWLoss (module member) -----------------------------
# The depthwise 3x3 Sobel convs (zero padding) are linear and separable, and
# the loss only depends on xd = x1 - x2:
#   Ix1-Ix2 = conv(xd, sobel_x) = hdiff(vsmooth(xd))
#   Iy1-Iy2 = conv(xd, sobel_y) = hsmooth(vdiff(xd))
# Vertical pass: ONE fused (2H,H) band-matrix @ (H, G*W) MXU matmul over a
# lane-concatenated slab of planes.  Horizontal pass: +-1 lane stencil via
# pltpu.roll with hoisted plane-boundary masks.

def _gw_kernel(xd_ref, o_ref, band_ref, mfirst_ref, mlast_ref, acc_ref, *,
               w, plane_w, total_lanes, need_mask, acc_rows):
    n = pl.program_id(0)
    h, gwb = xd_ref.shape

    @pl.when(n == 0)
    def _():
        # fused band matrix: rows [0,H) = vertical smoothing [1,2,1],
        #                    rows [H,2H) = vertical difference [-1,0,1]
        r = jax.lax.broadcasted_iota(jnp.int32, (2 * h, h), 0)
        c = jax.lax.broadcasted_iota(jnp.int32, (2 * h, h), 1)
        smooth = jnp.where(c == r, 2.0,
                           jnp.where(jnp.abs(c - r) == 1, 1.0, 0.0))
        rd = r - h
        diff = (jnp.where(c == rd + 1, 1.0, 0.0)
                - jnp.where(c == rd - 1, 1.0, 0.0))
        band_ref[...] = jnp.where(r < h, smooth, diff).astype(jnp.float32)

        # plane-boundary masks hoisted to scratch: gwb is a multiple of
        # lcm(W,128) whenever the grid has >1 step, so lane % W is identical
        # on every step (grid==1 trivially OK).
        lane = jax.lax.broadcasted_iota(jnp.int32, (h, gwb), 1)
        wpos = lane % plane_w
        mfirst_ref[...] = (wpos != 0).astype(jnp.float32)
        mlast_ref[...] = (wpos != plane_w - 1).astype(jnp.float32)

        acc_ref[...] = jnp.zeros_like(acc_ref)

    xd = xd_ref[...].astype(jnp.float32)
    if need_mask:
        # zero block-overhang lanes right after load so no garbage ever flows
        # through the matmul / rolls (overhang columns then contribute 0 loss).
        lane = jax.lax.broadcasted_iota(jnp.int32, (h, gwb), 1)
        xd = jnp.where(n * gwb + lane < total_lanes, xd, 0.0)

    # vertical pass: single (2H,H) @ (H, gwb) matmul; slice smooth/diff halves
    sd = jnp.dot(band_ref[...], xd, preferred_element_type=jnp.float32)
    s = sd[:h, :]
    d = sd[h:, :]

    mf = mfirst_ref[...]
    ml = mlast_ref[...]

    def left(v):                                 # v[., j-1], zero at plane edge
        return mf * pltpu.roll(v, shift=1, axis=1)

    def right(v):                                # v[., j+1], zero at plane edge
        return ml * pltpu.roll(v, shift=gwb - 1, axis=1)

    ix = right(s) - left(s)                      # horizontal difference
    iy = left(d) + 2.0 * d + right(d)            # horizontal smoothing

    loss = (1.0 + w * jnp.abs(ix)) * (1.0 + w * jnp.abs(iy)) * jnp.abs(xd)
    if acc_rows == h:
        acc_ref[...] += loss
    else:
        # (8,gwb) accumulator: tile-aligned sublane fold, pure VPU adds
        acc_ref[...] += jnp.sum(
            loss.reshape(h // _SUBLANES, _SUBLANES, gwb), axis=0)

    @pl.when(n == pl.num_programs(0) - 1)
    def _():
        o_ref[0, 0] = jnp.sum(acc_ref[...])


def pallas_gw_loss(x1, x2, w=4.0, reduction="mean",
                   vmem_budget_bytes=_GW_VMEM_BUDGET):
    assert x1.shape == x2.shape
    B, C, H, W = x1.shape
    P = B * C
    L = P * W

    # single difference slab: (B,C,H,W) -> (H, P*W), planes along the lane axis
    xd = (x1.astype(jnp.float32) - x2.astype(jnp.float32)).reshape(P, H, W)
    xd = jnp.transpose(xd, (1, 0, 2)).reshape(H, L)

    # lanes per grid step, sized against ~14 live (H, gwb) f32 slabs
    lane_fit = max(_LANES,
                   ((vmem_budget_bytes // (14 * H * 4)) // _LANES) * _LANES)
    l_pad = _round_up(L, _LANES)
    if l_pad <= lane_fit:
        gwb = l_pad                                  # whole slab in one step
    else:
        # multiple of lcm(W,128): plane boundaries stay aligned to block edges
        unit = (W * _LANES) // math.gcd(W, _LANES)
        gwb = max(unit, (lane_fit // unit) * unit)
    grid = pl.cdiv(L, gwb)
    need_mask = (grid * gwb != L)
    acc_rows = _SUBLANES if H % _SUBLANES == 0 else H

    kern = functools.partial(_gw_kernel, w=float(w), plane_w=W,
                             total_lanes=L, need_mask=need_mask,
                             acc_rows=acc_rows)
    total = pl.pallas_call(
        kern,
        out_shape=jax.ShapeDtypeStruct((1, 1), jnp.float32),
        grid_spec=pltpu.PrefetchScalarGridSpec(
            num_scalar_prefetch=0,
            grid=(grid,),
            in_specs=[pl.BlockSpec((H, gwb), lambda n: (0, n))],
            out_specs=pl.BlockSpec(memory_space=pltpu.MemorySpace.SMEM),
            scratch_shapes=[pltpu.VMEM((2 * H, H), jnp.float32),    # fused bands
                            pltpu.VMEM((H, gwb), jnp.float32),      # not-first mask
                            pltpu.VMEM((H, gwb), jnp.float32),      # not-last mask
                            pltpu.VMEM((acc_rows, gwb), jnp.float32)]),
        compiler_params=pltpu.CompilerParams(
            dimension_semantics=("arbitrary",)),
    )(xd)[0, 0]
    if reduction == "mean":
        return total / jnp.float32(B * C * H * W)
    return total


# ------------------------- TextFocusLoss.forward ------------------------------

def text_focus_loss_forward(sr_img, hr_img, label=None, text_focus=False):
    mse_loss = pallas_mse(sr_img, hr_img)
    if text_focus:
        # TODO(synk): requires the pretrained Transformer recognizer (.pth weights,
        # architecture not provided) + host-side label encoding -> not reproducible.
        raise NotImplementedError(
            "text_focus branch needs an external pretrained transformer")
    attention_loss = -1.0
    recognition_loss = -1.0
    loss = mse_loss
    return loss, mse_loss, attention_loss, recognition_loss


# ------------------------- plain-JAX references (sanity checks) ---------------

def _gw_ref(x1, x2, w=4.0):
    sobel_x = jnp.array([[-1, 0, 1], [-2, 0, 2], [-1, 0, 1]], jnp.float32)
    sobel_y = jnp.array([[-1, -2, -1], [0, 0, 0], [1, 2, 1]], jnp.float32)
    C = x1.shape[1]
    wx = jnp.broadcast_to(sobel_x, (C, 1, 3, 3))
    wy = jnp.broadcast_to(sobel_y, (C, 1, 3, 3))

    def conv(x, k):
        return jax.lax.conv_general_dilated(
            x, k, (1, 1), ((1, 1), (1, 1)),
            dimension_numbers=("NCHW", "OIHW", "NCHW"),
            feature_group_count=C)

    ix1, ix2 = conv(x1, wx), conv(x2, wx)
    iy1, iy2 = conv(x1, wy), conv(x2, wy)
    loss = (1 + w * jnp.abs(ix1 - ix2)) * (1 + w * jnp.abs(iy1 - iy2)) * jnp.abs(x1 - x2)
    return jnp.mean(loss)


if __name__ == "__main__":
    key = jax.random.PRNGKey(0)
    k1, k2, k3, k4, k5, k6 = jax.random.split(key, 6)
    B, C, H, W = 2, 3, 16, 16
    sr_img = jax.random.normal(k1, (B, C, H, W), jnp.float32)
    hr_img = jax.random.normal(k2, (B, C, H, W), jnp.float32)

    # ---- forward pass (non-text-focus branch) ----
    loss, mse, att, rec = text_focus_loss_forward(sr_img, hr_img,
                                                  label=None, text_focus=False)
    loss = jax.block_until_ready(loss)
    ref_mse = jnp.mean((sr_img - hr_img) ** 2)
    assert jnp.allclose(mse, ref_mse, rtol=1e-5, atol=1e-5), (mse, ref_mse)
    assert att == -1.0 and rec == -1.0

    # MSE: exercise the dual-core split (nb >= 2) and the full/partial blocks
    a_big = jax.random.normal(k3, (2, 3, 256, 256), jnp.float32)
    b_big = jax.random.normal(k4, (2, 3, 256, 256), jnp.float32)
    mse_big = jax.block_until_ready(pallas_mse(a_big, b_big))
    ref_big = jnp.mean((a_big - b_big) ** 2)
    assert jnp.allclose(mse_big, ref_big, rtol=1e-5, atol=1e-5), (mse_big, ref_big)

    # MSE: exercise the unaligned-tail (pure-JAX) path
    a_odd = jax.random.normal(k5, (2, 3, 7, 9), jnp.float32)
    b_odd = jax.random.normal(k6, (2, 3, 7, 9), jnp.float32)
    mse_odd = jax.block_until_ready(pallas_mse(a_odd, b_odd))
    ref_odd = jnp.mean((a_odd - b_odd) ** 2)
    assert jnp.allclose(mse_odd, ref_odd, rtol=1e-5, atol=1e-5), (mse_odd, ref_odd)

    # ---- auxiliary kernels owned by the module ----
    gray = jax.block_until_ready(pallas_to_gray(hr_img))
    assert gray.shape == (B, 1, H, W)
    gray_ref = (0.299 * hr_img[:, 0:1] + 0.587 * hr_img[:, 1:2]
                + 0.114 * hr_img[:, 2:3])
    assert jnp.allclose(gray, gray_ref, rtol=1e-5, atol=1e-5)

    gw = jax.block_until_ready(pallas_gw_loss(sr_img, hr_img))
    gw_ref = _gw_ref(sr_img, hr_img)
    assert jnp.allclose(gw, gw_ref, rtol=1e-4, atol=1e-4), (gw, gw_ref)

    # GWLoss with a forced multi-step lane grid (hoisted masks across steps)
    x1t = jax.random.normal(k3, (2, 3, 16, 64), jnp.float32)
    x2t = jax.random.normal(k4, (2, 3, 16, 64), jnp.float32)
    gw_t = jax.block_until_ready(
        pallas_gw_loss(x1t, x2t, vmem_budget_bytes=1 << 17))
    gw_t_ref = _gw_ref(x1t, x2t)
    assert jnp.allclose(gw_t, gw_t_ref, rtol=1e-4, atol=1e-4), (gw_t, gw_t_ref)

    print("KERNEL_OK")
</pallas_src>

<mosaic_0001>
module attributes {stable_mosaic.version = 11 : i64} {
  func.func @_sse_kernel(%arg0: i32, %arg1: i32, %arg2: memref<16x128xf32, #tpu.memory_space<vmem>>, %arg3: memref<16x128xf32, #tpu.memory_space<vmem>>, %arg4: memref<1x8x128xf32, #tpu.memory_space<vmem>>, %arg5: memref<8x128xf32, #tpu.memory_space<vmem>>) attributes {dimension_semantics = [#tpu.dimension_semantics<parallel>, #tpu.dimension_semantics<arbitrary>], iteration_bounds = array<i64: 1, 1>, scalar_prefetch = 0 : i64, scratch_operands = 1 : i64, tpu.core_type = #tpu.core_type<tc>, window_params = [{transform_indices = @transform_0, window_bounds = array<i64: 16, 128>}, {transform_indices = @transform_1, window_bounds = array<i64: 16, 128>}, {transform_indices = @transform_2, window_bounds = array<i64: 1, 8, 128>}]} {
    %c0_i32 = arith.constant 0 : i32
    %0 = arith.cmpi eq, %arg1, %c0_i32 : i32
    %1 = arith.extui %0 : i1 to i32
    %c0_i32_0 = arith.constant 0 : i32
    %2 = arith.cmpi ne, %1, %c0_i32_0 : i32
    scf.if %2 {
      %cst = arith.constant 0.000000e+00 : f32
      %20 = vector.broadcast %cst : f32 to vector<8x128xf32>
      %c0_9 = arith.constant 0 : index
      %c0_10 = arith.constant 0 : index
      %21 = vector.load %arg5[%c0_9, %c0_10] : memref<8x128xf32, #tpu.memory_space<vmem>>, vector<8x128xf32>
      tpu.vector_store %arg5[%c0_9, %c0_10], %20 {strides = array<i32>} : memref<8x128xf32, #tpu.memory_space<vmem>>, vector<8x128xf32>,
    } else {
    }
    %c0 = arith.constant 0 : index
    %c0_1 = arith.constant 0 : index
    %3 = vector.load %arg2[%c0, %c0_1] : memref<16x128xf32, #tpu.memory_space<vmem>>, vector<16x128xf32>
    %c0_2 = arith.constant 0 : index
    %c0_3 = arith.constant 0 : index
    %4 = vector.load %arg3[%c0_2, %c0_3] : memref<16x128xf32, #tpu.memory_space<vmem>>, vector<16x128xf32>
    %5 = arith.subf %3, %4 : vector<16x128xf32>
    %6 = arith.mulf %5, %5 : vector<16x128xf32>
    %c1_i32 = arith.constant 1 : i32
    %7 = arith.muli %arg0, %c1_i32 : i32
    %8 = arith.addi %7, %arg1 : i32
    %c1_i32_4 = arith.constant 1 : i32
    %9 = arith.addi %8, %c1_i32_4 : i32
    %c16_i32 = arith.constant 16 : i32
    %10 = arith.muli %9, %c16_i32 : i32
    %c12_i32 = arith.constant 12 : i32
    %11 = arith.cmpi sle, %10, %c12_i32 : i32
    %12 = arith.extui %11 : i1 to i32
    %c0_i32_5 = arith.constant 0 : i32
    %13 = arith.cmpi ne, %12, %c0_i32_5 : i32
    scf.if %13 {
      %c0_9 = arith.constant 0 : index
      %c0_10 = arith.constant 0 : index
      %20 = vector.load %arg5[%c0_9, %c0_10] : memref<8x128xf32, #tpu.memory_space<vmem>>, vector<8x128xf32>
      %21 = vector.shape_cast %6 : vector<16x128xf32> to vector<2x8x128xf32>
      %cst = arith.constant dense<0.000000e+00> : vector<8x128xf32>
      %22 = vector.multi_reduction <add>, %21, %cst [0] : vector<2x8x128xf32> to vector<8x128xf32>
      %23 = arith.addf %20, %22 : vector<8x128xf32>
      %c0_11 = arith.constant 0 : index
      %c0_12 = arith.constant 0 : index
      %24 = vector.load %arg5[%c0_11, %c0_12] : memref<8x128xf32, #tpu.memory_space<vmem>>, vector<8x128xf32>
      tpu.vector_store %arg5[%c0_11, %c0_12], %23 {strides = array<i32>} : memref<8x128xf32, #tpu.memory_space<vmem>>, vector<8x128xf32>,
    } else {
    }
    %true = arith.constant true
    %14 = arith.xori %11, %true : i1
    %15 = arith.extui %14 : i1 to i32
    %c0_i32_6 = arith.constant 0 : i32
    %16 = arith.cmpi ne, %15, %c0_i32_6 : i32
    scf.if %16 {
      %c16_i32_9 = arith.constant 16 : i32
      %20 = arith.muli %8, %c16_i32_9 : i32
      %21 = tpu.iota {dimensions = array<i32: 0>} : vector<16x128xi32>
      %22 = vector.broadcast %20 : i32 to vector<16x128xi32>
      %23 = arith.addi %22, %21 : vector<16x128xi32>
      %c12_i32_10 = arith.constant 12 : i32
      %24 = vector.broadcast %c12_i32_10 : i32 to vector<16x128xi32>
      %25 = arith.cmpi slt, %23, %24 : vector<16x128xi32>
      %cst = arith.constant 0.000000e+00 : f32
      %26 = vector.broadcast %cst : f32 to vector<16x128xf32>
      %27 = arith.select %25, %6, %26 : vector<16x128xi1>, vector<16x128xf32>
      %c0_11 = arith.constant 0 : index
      %c0_12 = arith.constant 0 : index
      %28 = vector.load %arg5[%c0_11, %c0_12] : memref<8x128xf32, #tpu.memory_space<vmem>>, vector<8x128xf32>
      %29 = vector.shape_cast %27 : vector<16x128xf32> to vector<2x8x128xf32>
      %cst_13 = arith.constant dense<0.000000e+00> : vector<8x128xf32>
      %30 = vector.multi_reduction <add>, %29, %cst_13 [0] : vector<2x8x128xf32> to vector<8x128xf32>
      %31 = arith.addf %28, %30 : vector<8x128xf32>
      %c0_14 = arith.constant 0 : index
      %c0_15 = arith.constant 0 : index
      %32 = vector.load %arg5[%c0_14, %c0_15] : memref<8x128xf32, #tpu.memory_space<vmem>>, vector<8x128xf32>
      tpu.vector_store %arg5[%c0_14, %c0_15], %31 {strides = array<i32>} : memref<8x128xf32, #tpu.memory_space<vmem>>, vector<8x128xf32>,
    } else {
    }
    %c0_i32_7 = arith.constant 0 : i32
    %17 = arith.cmpi eq, %arg1, %c0_i32_7 : i32
    %18 = arith.extui %17 : i1 to i32
    %c0_i32_8 = arith.constant 0 : i32
    %19 = arith.cmpi ne, %18, %c0_i32_8 : i32
    scf.if %19 {
      %c0_9 = arith.constant 0 : index
      %c0_10 = arith.constant 0 : index
      %20 = vector.load %arg5[%c0_9, %c0_10] : memref<8x128xf32, #tpu.memory_space<vmem>>, vector<8x128xf32>
      %21 = vector.shape_cast %20 : vector<8x128xf32> to vector<1x8x128xf32>
      %c0_11 = arith.constant 0 : index
      %c0_12 = arith.constant 0 : index
      %c0_13 = arith.constant 0 : index
      %22 = vector.load %arg4[%c0_11, %c0_12, %c0_13] : memref<1x8x128xf32, #tpu.memory_space<vmem>>, vector<1x8x128xf32>
      tpu.vector_store %arg4[%c0_11, %c0_12, %c0_13], %21 {strides = array<i32>} : memref<1x8x128xf32, #tpu.memory_space<vmem>>, vector<1x8x128xf32>,
    } else {
    }
    return
  }
  func.func @transform_0(%arg0: i32, %arg1: i32) -> (i32, i32) {
    %c1_i32 = arith.constant 1 : i32
    %0 = arith.muli %arg0, %c1_i32 : i32
    %1 = arith.addi %0, %arg1 : i32
    %c0_i32 = arith.constant 0 : i32
    %2 = arith.minsi %1, %c0_i32 : i32
    %c0_i32_0 = arith.constant 0 : i32
    %c0_i32_1 = arith.constant 0 : i32
    return %2, %c0_i32_0 : i32, i32
  }
  func.func @transform_1(%arg0: i32, %arg1: i32) -> (i32, i32) {
    %c1_i32 = arith.constant 1 : i32
    %0 = arith.muli %arg0, %c1_i32 : i32
    %1 = arith.addi %0, %arg1 : i32
    %c0_i32 = arith.constant 0 : i32
    %2 = arith.minsi %1, %c0_i32 : i32
    %c0_i32_0 = arith.constant 0 : i32
    %c0_i32_1 = arith.constant 0 : i32
    return %2, %c0_i32_0 : i32, i32
  }
  func.func @transform_2(%arg0: i32, %arg1: i32) -> (i32, i32, i32) {
    %c0_i32 = arith.constant 0 : i32
    %c0_i32_0 = arith.constant 0 : i32
    %c0_i32_1 = arith.constant 0 : i32
    return %arg0, %c0_i32, %c0_i32_0 : i32, i32, i32
  }
}

</mosaic_0001>

<bundles_post_ra>
// kernel: tpu_custom_call.1
= control target key start
LH: loop header
LB: loop body
LE: loop exit
PB: predicated region body
PF: predicated region fallthrough
CT: control target
= control target key end

     0   :  { %7 = vsyncpa [#allocation4], 0  ;;  %s261_s0 = inlined_call_operand.hbm [shape: f32[12,128], index: 0, kind: input, shape index: {}]   ;;  %s262_s1 = inlined_call_operand.hbm [shape: f32[12,128], index: 1, kind: input, shape index: {}]   ;;  %s263_s2 = inlined_call_operand.hbm [shape: f32[1,8,128], index: 2, kind: output, shape index: {}]  }
   0x1   :  { %8 = vsyncpa [#allocation7], 0 }
   0x2   :  { %9 = vsyncpa [#allocation5], 0  ;;  %s205_s9 = smov [#allocation3]   ;;  %s133_s13 = scalar_lea.hbm %s261_s0, 256 }
   0x3   :  { %s21_s10 = sshll.u32 %s205_s9, 4  ;;  %p134_p0 = scmp.ne.s32.totalorder %s261_s0, %s133_s13  ;;  %s22_s10 = int_to_ptr.vmem [resolvable:$true] %s21_s10 }
   0x4   :  { %p137_p1 = scmp.lt.u32.totalorder %s133_s13, %s261_s0 }
   0x6   :  { %p139_p2 = pnand %p137_p1, %p134_p0 }
   0x8   :  { %142 = shalt.err (!%p139_p2)
}
   0x9   :  { %s143_s18 = scalar_lea.vmem %s22_s10, 256  ;;  %p148_p4 = scmp.lt.s32.totalorder %s22_s10, %s22_s10 }
   0xa   :  { %p144_p3 = scmp.ne.s32.totalorder %s22_s10, %s143_s18  ;;  %p149_p5 = scmp.lt.s32.totalorder %s143_s18, %s143_s18 }
   0xc   :  { %p150_p6 = por %p149_p5, %p148_p4 }
   0xe   :  { %p151_p7 = pnand %p150_p6, %p144_p3 }
  0x10   :  { %154 = shalt.err (!%p151_p7)
}
  0x11   :  { %s206_s19 = smov 128   ;;  %s207_s20 = smov 8  }
  0x12   :  { %27 = dma.hbm_to_vmem [thread:$0]  %s261_s0, 256, %s22_s10, [#allocation4], %s206_s19, %s206_s19, %s207_s20  }
  0x13   :  { %s208_s23 = smov [#allocation6]   ;;  %s155_s27 = scalar_lea.hbm %s262_s1, 256 }
  0x14   :  { %s39_s24 = sshll.u32 %s208_s23, 4  ;;  %p156_p8 = scmp.ne.s32.totalorder %s262_s1, %s155_s27  ;;  %s40_s24 = int_to_ptr.vmem [resolvable:$true] %s39_s24 }
  0x15   :  { %p159_p9 = scmp.lt.u32.totalorder %s155_s27, %s262_s1 }
  0x17   :  { %p161_p10 = pnand %p159_p9, %p156_p8 }
  0x19   :  { %164 = shalt.err (!%p161_p10)
}
  0x1a   :  { %s165_s4 = scalar_lea.vmem %s40_s24, 256  ;;  %p170_p12 = scmp.lt.s32.totalorder %s40_s24, %s40_s24 }
  0x1b   :  { %p166_p11 = scmp.ne.s32.totalorder %s40_s24, %s165_s4  ;;  %p171_p13 = scmp.lt.s32.totalorder %s165_s4, %s165_s4 }
  0x1d   :  { %p172_p0 = por %p171_p13, %p170_p12 }
  0x1f   :  { %p173_p1 = pnand %p172_p0, %p166_p11 }
  0x21   :  { %176 = shalt.err (!%p173_p1)
}
  0x22   :  { %45 = dma.hbm_to_vmem [thread:$0]  %s262_s1, 256, %s40_s24, [#allocation7], %s206_s19, %s206_s19, %s207_s20  }
  0x23   :  { %199 = dma.done.wait [#allocation4], 256  }
  0x24   :  { %200 = vsyncadd [#allocation4], 4294967040 }
  0x25   :  { %201 = dma.done.wait [#allocation7], 256  }
  0x26   :  { %202 = vsyncadd [#allocation7], 4294967040  ;;  %v89_v0 = vlaneseq  ;;  %v65_v3 = vld [vmem:[#allocation3] sm:$0xff]  ;;  %v66_v4 = vld [vmem:[#allocation3 + $0x8] sm:$0xff]  ;;  %s209_s6 = smov [#allocation8]  }
  0x27   :  { %v67_v5 = vld [vmem:[#allocation6] sm:$0xff]  ;;  %v68_v6 = vld [vmem:[#allocation6 + $0x8] sm:$0xff]  ;;  %s114_s7 = sshll.u32 %s209_s6, 4  ;;  %s115_s7 = int_to_ptr.vmem [resolvable:$true] %s114_s7 }
  0x28   :  { %v90_v1 = vshrl.u32 %v89_v0, 7  ;;  %v69_v7 = vsub.f32 %v65_v3, %v67_v5  ;;  %v70_v8 = vsub.f32 %v66_v4, %v68_v6  ;;  %s177_s1 = scalar_lea.vmem %s115_s7, 128  ;;  %p182_p3 = scmp.lt.s32.totalorder %s115_s7, %s115_s7 }
  0x29   :  { %p178_p2 = scmp.ne.s32.totalorder %s115_s7, %s177_s1  ;;  %p183_p4 = scmp.lt.s32.totalorder %s177_s1, %s177_s1 }
  0x2a   :  { %v91_v2 = vadd.s32 8, %v90_v1  ;;  %v71_v9 = vmul.f32 %v69_v7, %v69_v7  ;;  %v72_v10 = vmul.f32 %v70_v8, %v70_v8 }
  0x2b   :  { %p184_p5 = por %p183_p4, %p182_p3 }
  0x2c   :  { %vm96_vm0 = vcmp.lt.s32.totalorder %v91_v2, 12 }
  0x2d   :  { %v98_v11 = vsel %vm96_vm0, %v72_v10, 0.0  ;;  %p185_p6 = pnand %p184_p5, %p178_p2 }
  0x2e   :  { %v100_v12 = vadd.f32 %v98_v11, %v71_v9 }
  0x30   :  { %107 = vst [vmem:[#allocation8] sm:$0xff] %v100_v12 }
  0x31   :  { %188 = shalt.err (!%p185_p6)
}
  0x32   :  { %s189_s10 = scalar_lea.hbm %s263_s2, 128 }
  0x33   :  { %p190_p7 = scmp.ne.s32.totalorder %s263_s2, %s189_s10  ;;  %p193_p8 = scmp.lt.u32.totalorder %s189_s10, %s263_s2 }
  0x35   :  { %p195_p9 = pnand %p193_p8, %p190_p7 }
  0x37   :  { %198 = shalt.err (!%p195_p9)
}
  0x38   :  { %117 = dma.vmem_to_hbm [thread:$0]  %s115_s7, 128, %s263_s2, [#allocation5]  }
  0x39   :  { %203 = dma.done.wait [#allocation5], 128  }
  0x3a   :  { %204 = vsyncadd [#allocation5], 4294967168 }
  0x3b   :  { %121 = vsyncpa [#allocation4], 1 }
  0x3c   :  { %122 = vsyncpa [#allocation7], 1 }
  0x3d   :  { %123 = vsyncpa [#allocation5], 1 }

</bundles_post_ra>
